<compile_context>
chip_gen: v5e
topology: v5e:2x2
jax: 0.10.0
libtpu: 0.0.40
codegen_flags: <defaults>
</compile_context>

<pallas_src>
import functools

import jax
import jax.numpy as jnp
from jax import lax
from jax.experimental import pallas as pl
from jax.experimental.pallas import tpu as pltpu

_NEG_BIG = -1e30   # finite "-inf" for segment padding (avoids inf-inf NaN edge cases)
_STRIP = 128       # lane-strip width inside the kernel (bounds vreg live ranges)


def _round_up(a, b):
    return (a + b - 1) // b * b


def cw_arnn_kernel(x_ref, wcol_ref, bcol_ref, sc_ref, o_ref, *, Kp):
    # x_ref    : (TB, N)  VMEM  batch tile (batch on sublanes, spins on lanes)
    # wcol_ref : (R, 1)   VMEM  rows = [weight_p pad0-to-Kp | weight_m pad0-to-Kp]
    # bcol_ref : (R, 1)   VMEM  rows = [bias_p  pad-1e30    | bias_m  pad-1e30  ]
    # sc_ref   : (4,)     SMEM  [weight_0p, weight_0m, weight_0, bias_0]
    # o_ref    : (1, TB)  VMEM  lane-dense output row for this batch tile
    x = x_ref[...]                                   # (TB, N)
    TB, N = x.shape
    wcol = wcol_ref[...]                             # (R, 1)
    bcol = bcol_ref[...]                             # (R, 1)
    # Static sublane slices (segments are padded to multiples of 8 rows).
    w_p, w_m = wcol[:Kp], wcol[Kp:]                  # (Kp, 1) each
    b_p, b_m = bcol[:Kp], bcol[Kp:]
    w0p = sc_ref[0]
    w0m = sc_ref[1]
    w0 = sc_ref[2]
    b0 = sc_ref[3]

    # Row-sum of x on the (otherwise idle) MXU, flash-attention-style NT matmul:
    #   (8, N) . (TB, N)^T -> (8, TB); every output row equals m_i over the tile.
    # Batch lands directly on the LANE axis, no separate relayout needed.
    ones = jnp.ones((8, N), x.dtype)
    m_all = lax.dot_general(ones, x, (((1,), (1,)), ((), ())),
                            preferred_element_type=jnp.float32)   # (8, TB) f32
    m_row = m_all[0:1, :]                                         # (1, TB)

    # Process the batch lanes in static 128-wide strips so the (Kp, S) working
    # sets (r, exp(r)) stay well inside the 64-vreg file even for TB=1024-2048.
    # TODO(synk): for K >> 128 a row-chunked online logsumexp would be needed
    # to keep the per-strip working set in vregs.
    for s in range(TB // _STRIP):
        lo, hi = s * _STRIP, (s + 1) * _STRIP
        m_s = m_row[:, lo:hi]                        # (1, S)

        # r[row, b] = bias[row] + weight[row] * m_i[b]; padded rows give -1e30.
        r_p = b_p + w_p * m_s                        # (Kp, S)
        r_m = b_m + w_m * m_s                        # (Kp, S)

        mx_p = jnp.max(r_p, axis=0, keepdims=True)   # (1, S)  (finite: real rows exist)
        mx_m = jnp.max(r_m, axis=0, keepdims=True)
        sum_p = jnp.sum(jnp.exp(r_p - mx_p), axis=0, keepdims=True)  # pad rows -> exp(~-1e30)=0
        sum_m = jnp.sum(jnp.exp(r_m - mx_m), axis=0, keepdims=True)
        lse_p = mx_p + jnp.log(sum_p)                # (1, S)
        lse_m = mx_m + jnp.log(sum_m)

        res_0 = b0 + w0 * m_s                        # scalar FMA (SMEM scalars)
        o_ref[:, lo:hi] = jax.nn.sigmoid(res_0 + w0p * lse_p + w0m * lse_m)


def cw_arnn_forward(x, weight_p, bias_p, weight_m, bias_m,
                    weight_0p, weight_0m, weight_0, bias_0):
    x = jnp.asarray(x)
    if x.dtype != jnp.bfloat16:        # accept bf16 (spins are exact in bf16)
        x = x.astype(jnp.float32)
    B, N = x.shape
    K = int(jnp.shape(weight_p)[-1])
    Kp = _round_up(K, 8)               # per-segment rows, padded to sublane groups
    R = 2 * Kp                         # fused rows: [p segment | m segment]

    wp = jnp.asarray(weight_p, jnp.float32).reshape(-1)
    bp = jnp.asarray(bias_p, jnp.float32).reshape(-1)
    wm = jnp.asarray(weight_m, jnp.float32).reshape(-1)
    bm = jnp.asarray(bias_m, jnp.float32).reshape(-1)
    pad = Kp - K
    # Segment-aligned padding: weights -> 0, biases -> -1e30 (finite), so the
    # kernel needs no masks: pad rows contribute exp(-huge)=0 to each segment.
    wcol = jnp.concatenate([jnp.pad(wp, (0, pad)),
                            jnp.pad(wm, (0, pad))])[:, None]                    # (R, 1)
    bcol = jnp.concatenate([jnp.pad(bp, (0, pad), constant_values=_NEG_BIG),
                            jnp.pad(bm, (0, pad), constant_values=_NEG_BIG)])[:, None]
    scalars = jnp.stack([jnp.asarray(weight_0p, jnp.float32).reshape(()),
                         jnp.asarray(weight_0m, jnp.float32).reshape(()),
                         jnp.asarray(weight_0, jnp.float32).reshape(()),
                         jnp.asarray(bias_0, jnp.float32).reshape(())])          # (4,) SMEM

    # --- batch-tile selection --------------------------------------------------
    N_pad = _round_up(N, 128)                      # x tile is lane-padded in VMEM
    ebytes = jnp.dtype(x.dtype).itemsize
    TB = 2048
    # Double-buffered x tile + per-strip intermediates + params <= ~24 MiB
    # (safe under the 32 MiB scoped / 64 MiB physical VMEM of v7x).
    while TB > 128 and (2 * TB * N_pad * ebytes
                        + 4 * R * _STRIP * 4
                        + 2 * R * 128 * 4) > 24 * 1024 * 1024:
        TB //= 2
    # Megacore balance (v7x has 2 TCs): aim for >= 2 grid steps, even when possible.
    TB = min(TB, max(128, _round_up(-(-B // 2), 128)))
    G = -(-B // TB)
    if G > 1 and G % 2 == 1:
        TB = max(128, _round_up(-(-B // (G + 1)), 128))
        G = -(-B // TB)
    B_pad = G * TB
    if B_pad != B:
        x = jnp.pad(x, ((0, B_pad - B), (0, 0)))

    kernel = functools.partial(cw_arnn_kernel, Kp=Kp)
    out = pl.pallas_call(
        kernel,
        out_shape=jax.ShapeDtypeStruct((1, B_pad), jnp.float32),
        grid=(G,),
        in_specs=[
            pl.BlockSpec((TB, N), lambda i: (i, 0)),             # x: batch-tiled, pipelined
            pl.BlockSpec((R, 1), lambda i: (0, 0)),              # fused weight column
            pl.BlockSpec((R, 1), lambda i: (0, 0)),              # fused bias column
            pl.BlockSpec(memory_space=pltpu.MemorySpace.SMEM),   # [w0p, w0m, w0, b0]
        ],
        out_specs=pl.BlockSpec((1, TB), lambda i: (0, i)),       # lane-dense output strip
        compiler_params=pltpu.CompilerParams(
            dimension_semantics=("parallel",),                   # shard batch over TCs
            vmem_limit_bytes=48 * 1024 * 1024,
        ),
    )(x, wcol, bcol, scalars)

    return out.reshape(B_pad)[:B]                                # (B,)


def reference_forward(x, weight_p, bias_p, weight_m, bias_m,
                      weight_0p, weight_0m, weight_0, bias_0):
    m_i = x.sum(-1)                                              # (B,)
    res_p = bias_p + weight_p * m_i[:, None]                     # (B, K)
    res_p = weight_0p * jax.nn.logsumexp(res_p, axis=1)
    res_m = bias_m + weight_m * m_i[:, None]
    res_m = weight_0m * jax.nn.logsumexp(res_m, axis=1)
    res_0 = bias_0 + weight_0 * m_i
    return jax.nn.sigmoid(res_0 + res_p + res_m)


if __name__ == "__main__":
    def run_case(seed, B, N, n_i):
        N_i = N - n_i - 1
        K = N_i + 1
        key = jax.random.PRNGKey(seed)
        kx, kwp, kbp, kwm, kbm, k0p, k0m, kw0, kb0 = jax.random.split(key, 9)

        # +/-1 spin-like inputs (the model only uses x via x.sum(-1)).
        x = jnp.sign(jax.random.normal(kx, (B, N), dtype=jnp.float32))
        x = jnp.where(x == 0, 1.0, x)

        std = 1.0 / N
        weight_p = std * jax.random.normal(kwp, (1, K), dtype=jnp.float32)
        bias_p = std * jax.random.normal(kbp, (1, K), dtype=jnp.float32)
        weight_m = std * jax.random.normal(kwm, (1, K), dtype=jnp.float32)
        bias_m = std * jax.random.normal(kbm, (1, K), dtype=jnp.float32)
        weight_0p = std * jax.random.normal(k0p, (1,), dtype=jnp.float32)
        weight_0m = std * jax.random.normal(k0m, (1,), dtype=jnp.float32)
        weight_0 = std * jax.random.normal(kw0, (1,), dtype=jnp.float32)
        bias_0 = std * jax.random.normal(kb0, (1,), dtype=jnp.float32)

        out = cw_arnn_forward(x, weight_p, bias_p, weight_m, bias_m,
                              weight_0p, weight_0m, weight_0, bias_0)
        out = jax.block_until_ready(out)
        ref = reference_forward(x, weight_p, bias_p, weight_m, bias_m,
                                weight_0p, weight_0m, weight_0, bias_0)
        assert out.shape == (B,)
        assert jnp.allclose(out, ref, atol=1e-4, rtol=1e-4), (out, ref)

    # Small shape consistent with the module (primary test, PRNGKey(0)).
    run_case(0, B=8, N=16, n_i=3)
    # Larger batch to exercise the multi-step grid, strips and padding paths.
    run_case(1, B=1200, N=64, n_i=5)

    print("KERNEL_OK")
</pallas_src>

<mosaic_0001>
module attributes {stable_mosaic.version = 11 : i64} {
  func.func @cw_arnn_kernel(%arg0: i32, %arg1: memref<128x16xf32, #tpu.memory_space<vmem>>, %arg2: memref<32x1xf32, #tpu.memory_space<vmem>>, %arg3: memref<32x1xf32, #tpu.memory_space<vmem>>, %arg4: memref<4xf32, #tpu.memory_space<smem>>, %arg5: memref<1x128xf32, #tpu.memory_space<vmem>>) attributes {dimension_semantics = [#tpu.dimension_semantics<parallel>], iteration_bounds = array<i64: 1>, scalar_prefetch = 0 : i64, scratch_operands = 0 : i64, tpu.core_type = #tpu.core_type<tc>, window_params = [{transform_indices = @transform_0, window_bounds = array<i64: 128, 16>}, {pipeline_mode = #tpu.pipeline_mode<synchronous>, transform_indices = @transform_1, window_bounds = array<i64: 32, 1>}, {pipeline_mode = #tpu.pipeline_mode<synchronous>, transform_indices = @transform_2, window_bounds = array<i64: 32, 1>}, {transform_indices = @transform_3, window_bounds = array<i64: 4>}, {transform_indices = @transform_4, window_bounds = array<i64: 1, 128>}]} {
    %c0 = arith.constant 0 : index
    %c0_0 = arith.constant 0 : index
    %0 = vector.load %arg1[%c0, %c0_0] : memref<128x16xf32, #tpu.memory_space<vmem>>, vector<128x16xf32>
    %c0_1 = arith.constant 0 : index
    %c0_2 = arith.constant 0 : index
    %1 = vector.load %arg2[%c0_1, %c0_2] : memref<32x1xf32, #tpu.memory_space<vmem>>, vector<32x1xf32>
    %c0_3 = arith.constant 0 : index
    %c0_4 = arith.constant 0 : index
    %2 = vector.load %arg3[%c0_3, %c0_4] : memref<32x1xf32, #tpu.memory_space<vmem>>, vector<32x1xf32>
    %3 = vector.extract_strided_slice %1 {offsets = [0, 0], sizes = [16, 1], strides = [1, 1]} : vector<32x1xf32> to vector<16x1xf32>
    %4 = vector.extract_strided_slice %1 {offsets = [16, 0], sizes = [16, 1], strides = [1, 1]} : vector<32x1xf32> to vector<16x1xf32>
    %5 = vector.extract_strided_slice %2 {offsets = [0, 0], sizes = [16, 1], strides = [1, 1]} : vector<32x1xf32> to vector<16x1xf32>
    %6 = vector.extract_strided_slice %2 {offsets = [16, 0], sizes = [16, 1], strides = [1, 1]} : vector<32x1xf32> to vector<16x1xf32>
    %c0_5 = arith.constant 0 : index
    %7 = memref.load %arg4[%c0_5] : memref<4xf32, #tpu.memory_space<smem>>
    %c1 = arith.constant 1 : index
    %8 = memref.load %arg4[%c1] : memref<4xf32, #tpu.memory_space<smem>>
    %c2 = arith.constant 2 : index
    %9 = memref.load %arg4[%c2] : memref<4xf32, #tpu.memory_space<smem>>
    %c3 = arith.constant 3 : index
    %10 = memref.load %arg4[%c3] : memref<4xf32, #tpu.memory_space<smem>>
    %cst = arith.constant 1.000000e+00 : f32
    %11 = vector.broadcast %cst : f32 to vector<8x16xf32>
    %cst_6 = arith.constant dense<0.000000e+00> : vector<8x128xf32>
    %12 = tpu.matmul %11, %0, %cst_6 {dimension_numbers = #tpu.dot_dimension_numbers<[1], [1], [0], [0], [0, 0, 1, 0], [], []>} : vector<8x16xf32>, vector<128x16xf32>, vector<8x128xf32> -> vector<8x128xf32>
    %13 = vector.extract_strided_slice %12 {offsets = [0, 0], sizes = [1, 128], strides = [1, 1]} : vector<8x128xf32> to vector<1x128xf32>
    %14 = vector.broadcast %3 : vector<16x1xf32> to vector<16x128xf32>
    %15 = vector.broadcast %13 : vector<1x128xf32> to vector<16x128xf32>
    %16 = arith.mulf %14, %15 : vector<16x128xf32>
    %17 = vector.broadcast %5 : vector<16x1xf32> to vector<16x128xf32>
    %18 = arith.addf %17, %16 : vector<16x128xf32>
    %19 = vector.broadcast %4 : vector<16x1xf32> to vector<16x128xf32>
    %20 = vector.broadcast %13 : vector<1x128xf32> to vector<16x128xf32>
    %21 = arith.mulf %19, %20 : vector<16x128xf32>
    %22 = vector.broadcast %6 : vector<16x1xf32> to vector<16x128xf32>
    %23 = arith.addf %22, %21 : vector<16x128xf32>
    %cst_7 = arith.constant dense<0xFF800000> : vector<128xf32>
    %24 = vector.multi_reduction <maximumf>, %18, %cst_7 [0] : vector<16x128xf32> to vector<128xf32>
    %25 = vector.shape_cast %24 : vector<128xf32> to vector<1x128xf32>
    %cst_8 = arith.constant dense<0xFF800000> : vector<128xf32>
    %26 = vector.multi_reduction <maximumf>, %23, %cst_8 [0] : vector<16x128xf32> to vector<128xf32>
    %27 = vector.shape_cast %26 : vector<128xf32> to vector<1x128xf32>
    %28 = vector.broadcast %25 : vector<1x128xf32> to vector<16x128xf32>
    %29 = arith.subf %18, %28 : vector<16x128xf32>
    %30 = math.exp %29 : vector<16x128xf32>
    %cst_9 = arith.constant dense<0.000000e+00> : vector<128xf32>
    %31 = vector.multi_reduction <add>, %30, %cst_9 [0] : vector<16x128xf32> to vector<128xf32>
    %32 = vector.shape_cast %31 : vector<128xf32> to vector<1x128xf32>
    %33 = vector.broadcast %27 : vector<1x128xf32> to vector<16x128xf32>
    %34 = arith.subf %23, %33 : vector<16x128xf32>
    %35 = math.exp %34 : vector<16x128xf32>
    %cst_10 = arith.constant dense<0.000000e+00> : vector<128xf32>
    %36 = vector.multi_reduction <add>, %35, %cst_10 [0] : vector<16x128xf32> to vector<128xf32>
    %37 = vector.shape_cast %36 : vector<128xf32> to vector<1x128xf32>
    %38 = math.log %32 : vector<1x128xf32>
    %39 = arith.addf %25, %38 : vector<1x128xf32>
    %40 = math.log %37 : vector<1x128xf32>
    %41 = arith.addf %27, %40 : vector<1x128xf32>
    %42 = vector.broadcast %9 : f32 to vector<1x128xf32>
    %43 = arith.mulf %42, %13 : vector<1x128xf32>
    %44 = vector.broadcast %10 : f32 to vector<1x128xf32>
    %45 = arith.addf %44, %43 : vector<1x128xf32>
    %46 = vector.broadcast %7 : f32 to vector<1x128xf32>
    %47 = arith.mulf %46, %39 : vector<1x128xf32>
    %48 = arith.addf %45, %47 : vector<1x128xf32>
    %49 = vector.broadcast %8 : f32 to vector<1x128xf32>
    %50 = arith.mulf %49, %41 : vector<1x128xf32>
    %51 = arith.addf %48, %50 : vector<1x128xf32>
    %52 = arith.negf %51 : vector<1x128xf32>
    %53 = math.exp %52 : vector<1x128xf32>
    %cst_11 = arith.constant 1.000000e+00 : f32
    %54 = vector.broadcast %cst_11 : f32 to vector<1x128xf32>
    %55 = arith.addf %54, %53 : vector<1x128xf32>
    %56 = arith.divf %54, %55 : vector<1x128xf32>
    %c0_12 = arith.constant 0 : index
    %c0_13 = arith.constant 0 : index
    %57 = vector.load %arg5[%c0_12, %c0_13] : memref<1x128xf32, #tpu.memory_space<vmem>>, vector<1x128xf32>
    tpu.vector_store %arg5[%c0_12, %c0_13], %56 {strides = array<i32>} : memref<1x128xf32, #tpu.memory_space<vmem>>, vector<1x128xf32>,
    return
  }
  func.func @transform_0(%arg0: i32) -> (i32, i32) {
    %c0_i32 = arith.constant 0 : i32
    %c0_i32_0 = arith.constant 0 : i32
    return %arg0, %c0_i32 : i32, i32
  }
  func.func @transform_1(%arg0: i32) -> (i32, i32) {
    %c0_i32 = arith.constant 0 : i32
    %c0_i32_0 = arith.constant 0 : i32
    %c0_i32_1 = arith.constant 0 : i32
    return %c0_i32, %c0_i32_0 : i32, i32
  }
  func.func @transform_2(%arg0: i32) -> (i32, i32) {
    %c0_i32 = arith.constant 0 : i32
    %c0_i32_0 = arith.constant 0 : i32
    %c0_i32_1 = arith.constant 0 : i32
    return %c0_i32, %c0_i32_0 : i32, i32
  }
  func.func @transform_3(%arg0: i32) -> i32 {
    %c0_i32 = arith.constant 0 : i32
    %c0_i32_0 = arith.constant 0 : i32
    return %c0_i32 : i32
  }
  func.func @transform_4(%arg0: i32) -> (i32, i32) {
    %c0_i32 = arith.constant 0 : i32
    %c0_i32_0 = arith.constant 0 : i32
    return %c0_i32, %arg0 : i32, i32
  }
}

</mosaic_0001>

<bundles_post_ra>
// kernel: tpu_custom_call.1
= control target key start
LH: loop header
LB: loop body
LE: loop exit
PB: predicated region body
PF: predicated region fallthrough
CT: control target
= control target key end

     0   :  { %9 = vsyncpa [#allocation4], 0  ;;  %s485_s0 = inlined_call_operand.vmem [shape: f32[128,16], index: 0, kind: input, shape index: {}]   ;;  %s486_s1 = inlined_call_operand.vmem [shape: f32[32,1], index: 1, kind: input, shape index: {}]   ;;  %s487_s2 = inlined_call_operand.vmem [shape: f32[32,1], index: 2, kind: input, shape index: {}]   ;;  %s488_s3 = inlined_call_operand.vmem [shape: f32[4], index: 3, kind: input, shape index: {}]   ;;  %s489_s4 = inlined_call_operand.hbm [shape: f32[1,128], index: 4, kind: output, shape index: {}]  }
   0x1   :  { %10 = vsyncpa [#allocation3], 0  ;;  %s22_s17 = sshll.u32 %s488_s3, 4  ;;  %s357_s18 = smov [#allocation2]   ;;  %s23_s17 = int_to_ptr.vmem [resolvable:$true] %s22_s17 }
   0x2   :  { %25 = dma.vmem_to_smem %s23_s17, 16, %s357_s18, [#allocation4]  }
   0x3   :  { %353 = dma.done.wait [#allocation4], 16  }
   0x4   :  { %354 = vsyncadd [#allocation4], 4294967280 }
   0x5   :  { %30 = sfence }
   0x6   :  { %v46_v0 = vld [vmem:[%s485_s0 + $0x78] sm:$0xff]  ;;  %vm59_vm0 = vcmask 130048   ;;  %v45_v1 = vld [vmem:[%s485_s0 + $0x70] sm:$0xff]  ;;  %v44_v2 = vld [vmem:[%s485_s0 + $0x68] sm:$0xff]  ;;  %v358_v7 = vmov 0   ;;  %v359_v25 = vmov 1.0  }
   0x7   :  { %276 = vmatpush.xpose.msk.msra.mxu0 %vm59_vm0, %v46_v0  ;;  %v43_v3 = vld [vmem:[%s485_s0 + $0x60] sm:$0xff]  ;;  %v42_v6 = vld [vmem:[%s485_s0 + $0x58] sm:$0xff]  ;;  %299 = vset.pattern.permute.xlu1 %v358_v7  ;;  %v41_v8 = vld [vmem:[%s485_s0 + $0x50] sm:$0xff]  ;;  %s55_s11 = sld [smem:[#allocation2]]  ;;  %s360_s14 = smov [#allocation5]  }
   0x8   :  { %v51_v4 = vld [vmem:[%s487_s2] sm:$0xff]  ;;  %298 = vset.pattern.permute.xlu0 %v358_v7  ;;  %300 = vset.pattern.permute.xlu2 %v358_v7  ;;  %v52_v9 = vld [vmem:[%s487_s2 + $0x8] sm:$0xff]  ;;  %v38_v13 = vld [vmem:[%s485_s0 + $0x38] sm:$0xff]  ;;  %s275_s12 = sld [smem:[#allocation2 + $0x3]]  ;;  %s261_s15 = sshll.u32 %s360_s14, 4  ;;  %s262_s15 = int_to_ptr.vmem [resolvable:$true] %s261_s15 }
   0x9   :  { %v47_v5 = vld [vmem:[%s486_s1] sm:$0xff]  ;;  %146 = vperm.xlu1 %299, %v51_v4   ;;  %v48_v10 = vld [vmem:[%s486_s1 + $0x8] sm:$0xff]  ;;  %v54_v14 = vld [vmem:[%s487_s2 + $0x18] sm:$0xff]  ;;  %s273_s13 = sld [smem:[#allocation2 + $0x1]]  ;;  %s263_s18 = sshll.u32 %s489_s4, 4  ;;  %s264_s18 = int_to_ptr.hbm [resolvable:$true] %s263_s18 }
   0xa   :  { %133 = vperm.xlu0 %298, %v47_v5   ;;  %v40_v11 = vld [vmem:[%s485_s0 + $0x48] sm:$0xff]  ;;  %v39_v12 = vld [vmem:[%s485_s0 + $0x40] sm:$0xff]  ;;  %v53_v15 = vld [vmem:[%s487_s2 + $0x10] sm:$0xff] }
   0xb   :  { %277 = vmatpush.xpose.msk.msra.mxu0 %vm59_vm0, %v45_v1  ;;  %v49_v16 = vld [vmem:[%s486_s1 + $0x10] sm:$0xff]  ;;  %v36_v18 = vld [vmem:[%s485_s0 + $0x28] sm:$0xff]  ;;  %v50_v19 = vld [vmem:[%s486_s1 + $0x18] sm:$0xff] }
   0xc   :  { %v37_v17 = vld [vmem:[%s485_s0 + $0x30] sm:$0xff]  ;;  %158 = vperm.xlu2 %300, %v49_v16   ;;  %v35_v20 = vld [vmem:[%s485_s0 + $0x20] sm:$0xff]  ;;  %v34_v21 = vld [vmem:[%s485_s0 + $0x18] sm:$0xff] }
   0xd   :  { %v33_v22 = vld [vmem:[%s485_s0 + $0x10] sm:$0xff]  ;;  %v32_v23 = vld [vmem:[%s485_s0 + $0x8] sm:$0xff]  ;;  %v31_v24 = vld [vmem:[%s485_s0] sm:$0xff]  ;;  %s274_s0 = sld [smem:[#allocation2 + $0x2]] }
   0xf   :  { %278 = vmatpush.xpose.msk.msra.mxu0 %vm59_vm0, %v44_v2 }
  0x11   :  { %151 = vperm.xlu1 %299, %v52_v9  }
  0x12   :  { %138 = vperm.xlu0 %298, %v48_v10  }
  0x13   :  { %279 = vmatpush.xpose.msk.msra.mxu0 %vm59_vm0, %v43_v3 }
  0x14   :  { %163 = vperm.xlu2 %300, %v50_v19  }
  0x17   :  { %280 = vmatpush.xpose.msk.msra.mxu0 %vm59_vm0, %v42_v6 }
  0x19   :  { %175 = vperm.xlu1 %299, %v54_v14  }
  0x1a   :  { %170 = vperm.xlu0 %298, %v53_v15  }
  0x1b   :  { %281 = vmatpush.xpose.msk.msra.mxu0 %vm59_vm0, %v41_v8 }
  0x1f   :  { %282 = vmatpush.xpose.msk.msra.mxu0 %vm59_vm0, %v40_v11 }
  0x23   :  { %283 = vmatpush.xpose.msk.msra.mxu0 %vm59_vm0, %v39_v12 }
  0x27   :  { %284 = vmatpush.xpose.msk.msra.mxu0 %vm59_vm0, %v38_v13 }
  0x2b   :  { %285 = vmatpush.xpose.msk.msra.mxu0 %vm59_vm0, %v37_v17 }
  0x2f   :  { %286 = vmatpush.xpose.msk.msra.mxu0 %vm59_vm0, %v36_v18 }
  0x33   :  { %287 = vmatpush.xpose.msk.msra.mxu0 %vm59_vm0, %v35_v20  ;;  %v226_v20 = vstv %s274_s0 }
  0x37   :  { %288 = vmatpush.xpose.msk.msra.mxu0 %vm59_vm0, %v34_v21 }
  0x3b   :  { %289 = vmatpush.xpose.msk.msra.mxu0 %vm59_vm0, %v33_v22 }
  0x3f   :  { %290 = vmatpush.xpose.msk.msra.mxu0 %vm59_vm0, %v32_v23 }
  0x43   :  { %291 = vmatpush.xpose.msk.msra.mxu0 %vm59_vm0, %v31_v24 }
  0x46   :  { %292 = vmatmul.msk.f32.vlgmr.msra.gmra.mxu0 %vm59_vm0, %v359_v25  ;;  %v228_v25 = vstv %s275_s12 }
  0x66   :  { %v159_v28 = vpop.permute.xlu2 %158 }
  0x6e   :  { %v164_v33 = vpop.permute.xlu2 %163 }
  0x7b   :  { %v147_v26 = vpop.permute.xlu1 %146 }
  0x7c   :  { %v134_v27 = vpop.permute.xlu0 %133 }
  0x83   :  { %v152_v29 = vpop.permute.xlu1 %151 }
  0x84   :  { %v139_v30 = vpop.permute.xlu0 %138 }
  0x8b   :  { %v176_v38 = vpop.permute.xlu1 %175 }
  0x8c   :  { %v171_v39 = vpop.permute.xlu0 %170 }
  0xc3   :  { %v478_v31 = vpop.f32.mrf.mxu0 }
  0xc4   :  { %v141_v32 = vperm.slane %v478_v31, 0  ;;  %v227_v23 = vmul.f32 %v226_v20, %v478_v31 }
  0xc6   :  { %v142_v34 = vmul.f32 %v141_v32, %v134_v27  ;;  %v143_v35 = vmul.f32 %v141_v32, %v139_v30  ;;  %v166_v36 = vmul.f32 %v159_v28, %v141_v32  ;;  %v167_v37 = vmul.f32 %v164_v33, %v141_v32 }
  0xc7   :  { %v229_v32 = vadd.f32 %v228_v25, %v227_v23 }
  0xc8   :  { %v154_v40 = vadd.f32 %v147_v26, %v142_v34  ;;  %v155_v41 = vadd.f32 %v152_v29, %v143_v35  ;;  %v178_v42 = vadd.f32 %v171_v39, %v166_v36  ;;  %v179_v43 = vadd.f32 %v176_v38, %v167_v37 }
  0xc9   :  { %v230_v26 = vstv %s55_s11  ;;  %v233_v29 = vstv %s273_s13 }
  0xca   :  { %v180_v44 = vmax.f32 %v154_v40, %v155_v41  ;;  %v187_v45 = vmax.f32 %v178_v42, %v179_v43 }
  0xcc   :  { %v181_v46 = vrot.slane %v180_v44, 4  ;;  %v188_v47 = vrot.slane %v187_v45, 4 }
  0xce   :  { %v182_v48 = vmax.f32 %v180_v44, %v181_v46  ;;  %v189_v49 = vmax.f32 %v187_v45, %v188_v47 }
  0xd0   :  { %v183_v50 = vrot.slane %v182_v48, 2  ;;  %v190_v51 = vrot.slane %v189_v49, 2 }
  0xd2   :  { %v184_v52 = vmax.f32 %v182_v48, %v183_v50  ;;  %v191_v53 = vmax.f32 %v189_v49, %v190_v51 }
  0xd4   :  { %v185_v54 = vrot.slane %v184_v52, 1  ;;  %v192_v55 = vrot.slane %v191_v53, 1 }
  0xd6   :  { %v186_v56 = vmax.f32 %v184_v52, %v185_v54  ;;  %v193_v57 = vmax.f32 %v191_v53, %v192_v55 }
  0xd8   :  { %v194_v58 = vsub.f32 %v154_v40, %v186_v56  ;;  %v195_v59 = vsub.f32 %v155_v41, %v186_v56  ;;  %v207_v60 = vsub.f32 %v178_v42, %v193_v57  ;;  %v208_v61 = vsub.f32 %v179_v43, %v193_v57 }
  0xda   :  { %v196_v62 = vmul.f32 1.442695, %v194_v58  ;;  %v198_v63 = vmul.f32 1.442695, %v195_v59  ;;  %v209_v0 = vmul.f32 1.442695, %v207_v60 }
  0xdb   :  { %v211_v1 = vmul.f32 1.442695, %v208_v61 }
  0xdc   :  { %301 = vpow2.f32 %v196_v62 }
  0xdd   :  { %303 = vpow2.f32 %v198_v63 }
  0xde   :  { %305 = vpow2.f32 %v209_v0 }
  0xdf   :  { %307 = vpow2.f32 %v211_v1 }
  0xe2   :  { %v302_v2 = vpop.eup %301 }
  0xe3   :  { %v304_v3 = vpop.eup %303 }
  0xe4   :  { %v306_v4 = vpop.eup %305  ;;  %v200_v5 = vadd.f32 %v304_v3, %v302_v2 }
  0xe5   :  { %v308_v6 = vpop.eup %307 }
  0xe6   :  { %v201_v7 = vrot.slane %v200_v5, 4  ;;  %v213_v8 = vadd.f32 %v308_v6, %v306_v4 }
  0xe8   :  { %v202_v9 = vadd.f32 %v201_v7, %v200_v5  ;;  %v214_v10 = vrot.slane %v213_v8, 4 }
  0xea   :  { %v203_v11 = vrot.slane %v202_v9, 2  ;;  %v215_v12 = vadd.f32 %v214_v10, %v213_v8 }
  0xec   :  { %v204_v13 = vadd.f32 %v203_v11, %v202_v9  ;;  %v216_v14 = vrot.slane %v215_v12, 2 }
  0xee   :  { %v205_v15 = vrot.slane %v204_v13, 1  ;;  %v217_v16 = vadd.f32 %v216_v14, %v215_v12 }
  0xf0   :  { %v206_v17 = vadd.f32 %v205_v15, %v204_v13  ;;  %v218_v18 = vrot.slane %v217_v16, 1 }
  0xf2   :  { %v219_v19 = vadd.f32 %v218_v18, %v217_v16  ;;  %309 = vlog2.f32 %v206_v17 }
  0xf4   :  { %311 = vlog2.f32 %v219_v19 }
  0xf8   :  { %v310_v21 = vpop.eup %309 }
  0xf9   :  { %v221_v22 = vmul.f32 0.6931472, %v310_v21 }
  0xfa   :  { %v312_v24 = vpop.eup %311 }
  0xfb   :  { %v222_v27 = vadd.f32 %v221_v22, %v186_v56  ;;  %v224_v28 = vmul.f32 0.6931472, %v312_v24 }
  0xfd   :  { %v225_v30 = vadd.f32 %v224_v28, %v193_v57  ;;  %v231_v33 = vmul.f32 %v230_v26, %v222_v27 }
  0xff   :  { %v232_v34 = vadd.f32 %v231_v33, %v229_v32  ;;  %v234_v35 = vmul.f32 %v233_v29, %v225_v30 }
 0x101   :  { %v235_v36 = vadd.f32 %v234_v35, %v232_v34 }
 0x103   :  { %v293_v37 = vmul.f32 -1.442695, %v235_v36 }
 0x105   :  { %313 = vpow2.f32 %v293_v37 }
 0x10b   :  { %v314_v38 = vpop.eup %313 }
 0x10c   :  { %v239_v39 = vadd.f32 1.0, %v314_v38 }
 0x10e   :  { %315 = vrcp.f32 %v239_v39  ;;  %v251_v42 = vand.u32 2147483648, %v239_v39  ;;  %v249_v44 = vand.u32 2147483647, %v239_v39  ;;  %vm245_vm2 = vweird.f32 %v239_v39 }
 0x110   :  { %v252_v46 = vor.u32 1.1754944e-38, %v251_v42  ;;  %vm250_vm4 = vcmp.eq.f32.partialorder %v249_v44, 8.507059e+37 }
 0x114   :  { %v316_v40 = vpop.eup %315 }
 0x115   :  { %v241_v41 = vmul.f32 %v316_v40, %v239_v39  ;;  %vm246_vm1 = vweird.f32 %v316_v40 }
 0x116   :  { %vm247_vm3 = vmor %vm245_vm2, %vm246_vm1 }
 0x117   :  { %v242_v31 = vsub.f32 1.0, %v241_v41 }
 0x119   :  { %v243_v43 = vmul.f32 %v316_v40, %v242_v31 }
 0x11b   :  { %v244_v45 = vadd.f32 %v316_v40, %v243_v43 }
 0x11d   :  { %v248_v47 = vsel %vm247_vm3, %v316_v40, %v244_v45 }
 0x11e   :  { %v253_v48 = vsel %vm250_vm4, %v252_v46, %v248_v47 }
 0x11f   :  { %255 = vst [vmem:[#allocation5] sm:$0x1] %v253_v48 }
 0x120   :  { %266 = dma.vmem_to_hbm [thread:$0]  %s262_s15, 16, %s264_s18, [#allocation3]  }
 0x121   :  { %355 = dma.done.wait [#allocation3], 16  }
 0x122   :  { %356 = vsyncadd [#allocation3], 4294967280 }
 0x123   :  { %271 = vsyncpa [#allocation3], 1 }
 0x124   :  { %272 = vsyncpa [#allocation4], 1 }

</bundles_post_ra>
